<compile_context>
chip_gen: v7x
topology: tpu7x:2x2x1
jax: 0.10.0
libtpu: 0.0.40
codegen_flags: <defaults>
</compile_context>

<pallas_src>
import math

import jax
import jax.numpy as jnp
from jax.experimental import pallas as pl

# ---------------------------------------------------------------------------
# Hyper-parameters (small shapes consistent with the module)
# ---------------------------------------------------------------------------
MODEL_SIZE = 32
BATCH = 2
SEQ = 8
MAX_LEN = 5000          # PyTorch default max_len
DROP_PROB = 0.1         # nn.Dropout(p=0.1) — identity at inference
# TODO(synk): training-mode dropout (scale-and-mask with pltpu.prng_*) not
#             implemented; forward uses deterministic eval semantics.


# ---------------------------------------------------------------------------
# Buffer construction (matches PositionalEncoding.__init__)
# ---------------------------------------------------------------------------
def make_positional_encoding(max_len, d_model):
    assert d_model % 2 == 0, "PE construction requires an even model_size"
    position = jnp.arange(max_len, dtype=jnp.float32)[:, None]
    div_term = jnp.exp(jnp.arange(0, d_model, 2, dtype=jnp.float32)
                       * (-math.log(10000.0) / d_model))
    pe = jnp.zeros((max_len, d_model), jnp.float32)
    pe = pe.at[:, 0::2].set(jnp.sin(position * div_term))
    pe = pe.at[:, 1::2].set(jnp.cos(position * div_term))
    return pe                      # (max_len, d_model)


# ---------------------------------------------------------------------------
# Pallas kernel: broadcast add (pe block has a leading size-1 batch dim)
# ---------------------------------------------------------------------------
def _pe_add_kernel(x_ref, pe_ref, o_ref):
    # out = x + pe[:S]   (dropout == identity in eval mode)
    o_ref[...] = x_ref[...] + pe_ref[...]


def positional_encoding_forward(x, pe):
    """x: (B, S, D) float32, pe: (max_len, D) float32 -> (B, S, D)."""
    B, S, D = x.shape
    if (S * D) % 128 == 0:
        # Lane-dense layout: last dim is a multiple of 128 -> unmasked stores.
        xk = x.reshape(B, S * D)
        pek = pe[:S].reshape(1, S * D)
    else:
        # Fallback for odd shapes: keep (B, S, D), still a single block.
        xk = x
        pek = pe[:S][None, :, :]

    out = pl.pallas_call(
        _pe_add_kernel,
        out_shape=jax.ShapeDtypeStruct(xk.shape, x.dtype),
        # Grid-less: one full-extent block per operand (everything fits VMEM).
        in_specs=[
            pl.BlockSpec(xk.shape, lambda: (0,) * xk.ndim),
            pl.BlockSpec(pek.shape, lambda: (0,) * pek.ndim),
        ],
        out_specs=pl.BlockSpec(xk.shape, lambda: (0,) * xk.ndim),
        # Elementwise, in-place shaped: reuse x's buffer for the output.
        input_output_aliases={0: 0},
    )(xk, pek)
    return out.reshape(B, S, D)


# ---------------------------------------------------------------------------
# Driver
# ---------------------------------------------------------------------------
if __name__ == "__main__":
    key = jax.random.PRNGKey(0)
    x = jax.random.normal(key, (BATCH, SEQ, MODEL_SIZE), jnp.float32)
    pe = make_positional_encoding(MAX_LEN, MODEL_SIZE)

    fwd = jax.jit(positional_encoding_forward)
    out = jax.block_until_ready(fwd(x, pe))

    # Reference: input + pe[:seq] broadcast over batch (dropout identity).
    ref = x + pe[:SEQ][None, :, :]

    assert out.shape == (BATCH, SEQ, MODEL_SIZE)
    assert bool(jnp.all(jnp.isfinite(out)))
    assert bool(jnp.allclose(out, ref, atol=1e-6, rtol=1e-6))
    print("KERNEL_OK")
</pallas_src>

<mosaic_0001>
module attributes {stable_mosaic.version = 11 : i64} {
  func.func @_pe_add_kernel(%arg0: memref<2x256xf32, #tpu.memory_space<vmem>>, %arg1: memref<1x256xf32, #tpu.memory_space<vmem>>, %arg2: memref<2x256xf32, #tpu.memory_space<vmem>>) attributes {dimension_semantics = [], scalar_prefetch = 0 : i64, scratch_operands = 0 : i64, tpu.core_type = #tpu.core_type<tc>} {
    %c0 = arith.constant 0 : index
    %c0_0 = arith.constant 0 : index
    %0 = vector.load %arg0[%c0, %c0_0] : memref<2x256xf32, #tpu.memory_space<vmem>>, vector<2x256xf32>
    %c0_1 = arith.constant 0 : index
    %c0_2 = arith.constant 0 : index
    %1 = vector.load %arg1[%c0_1, %c0_2] : memref<1x256xf32, #tpu.memory_space<vmem>>, vector<1x256xf32>
    %2 = vector.broadcast %1 : vector<1x256xf32> to vector<2x256xf32>
    %3 = arith.addf %0, %2 : vector<2x256xf32>
    %c0_3 = arith.constant 0 : index
    %c0_4 = arith.constant 0 : index
    %4 = vector.load %arg2[%c0_3, %c0_4] : memref<2x256xf32, #tpu.memory_space<vmem>>, vector<2x256xf32>
    tpu.vector_store %arg2[%c0_3, %c0_4], %3 {strides = array<i32>} : memref<2x256xf32, #tpu.memory_space<vmem>>, vector<2x256xf32>,
    return
  }
}

</mosaic_0001>

<bundles_post_ra>
// kernel: positional_encoding_forward.1
= control target key start
LH: loop header
LB: loop body
LE: loop exit
PB: predicated region body
PF: predicated region fallthrough
CT: control target
= control target key end

     0   :  { %v14_v0 = vlaneseq  ;;  %v38_v1 = vmov 1983009808   ;;  %s63_s1 = inlined_call_operand.vmem [shape: f32[1,256], index: 1, kind: input, shape index: {}]   ;;  %s64_s0 = inlined_call_operand.vmem [shape: f32[2,256], index: 0, kind: input, shape index: {}, may-alias: {0,2}]   ;;  %s65_s2 = inlined_call_operand.vmem [shape: f32[2,256], index: 2, kind: output, shape index: {}, may-alias: {0,2}]  }
   0x1   :  { %v24_v2 = vunpack.c.l.s4 %v38_v1  ;;  %v12_v4 = vld [vmem:[%s63_s1] sm:$0x3] }
   0x2   :  { %v15_v3 = vshrl.u32 %v14_v0, 7  ;;  %v11_v12 = vld [vmem:[%s64_s0] sm:$0xf] }
   0x3   :  { %v25_v5 = vunpack.c.0.s8 %v24_v2 }
   0x4   :  { %v16_v6 = vsub.s32 0, %v15_v3  ;;  %v20_v7 = vsub.s32 1, %v15_v3 }
   0x5   :  { %v28_v10 = vsub.s32 %v25_v5, %v15_v3 }
   0x6   :  { %v17_v8 = vrot.slane %v12_v4, %v16_v6  ;;  %v21_v9 = vrot.slane %v12_v4, %v20_v7 }
   0x8   :  { %v22_v11 = vcombine.low %v17_v8, %v21_v9 }
   0xa   :  { %v29_v13 = vrot.slane %v22_v11, %v28_v10 }
   0xc   :  { %v31_v14 = vadd.f32 %v29_v13, %v11_v12 }
   0xe   :  { %32 = vst [vmem:[%s65_s2] sm:$0xf] %v31_v14 }

</bundles_post_ra>
